<compile_context>
chip_gen: v6e
topology: v6e:2x2x1
jax: 0.10.0
libtpu: 0.0.40
codegen_flags: <defaults>
</compile_context>

<pallas_src>
import jax
import jax.numpy as jnp
from jax.experimental import pallas as pl
from jax.experimental.pallas import tpu as pltpu

LANES = 128  # packed output slab width (lane-dense writeback)


def lstm_a2c_kernel(x_ref, h0_ref, c0_ref, wx_ref, wh_ref, bg_ref, whd_ref, bhd_ref,
                    out_ref, h_sc, c_sc):
    t = pl.program_id(0)

    # Load the initial recurrent state into VMEM scratch once.
    @pl.when(t == 0)
    def _():
        h_sc[...] = h0_ref[...]
        c_sc[...] = c0_ref[...]

    x = x_ref[0]          # (B, I)
    h = h_sc[...]         # (B, H)
    c = c_sc[...]         # (B, H)
    B, H = h.shape

    # Gate pre-activations: two MXU dots (no in-kernel concat / relayout).
    gates = (jnp.dot(x, wx_ref[...], preferred_element_type=jnp.float32)
             + jnp.dot(h, wh_ref[...], preferred_element_type=jnp.float32)
             + bg_ref[...])                                   # (B, 4H)

    # Gate columns were reordered host-side to [i | f | o | g]:
    #   sigmoid over the first 3H lanes, tanh over the last H lanes.
    sig = jax.nn.sigmoid(gates[:, : 3 * H])
    g_g = jnp.tanh(gates[:, 3 * H:])
    i_g = sig[:, :H]
    f_g = sig[:, H:2 * H]
    o_g = sig[:, 2 * H:]

    c_new = f_g * c + i_g * g_g
    h_new = o_g * jnp.tanh(c_new)
    h_sc[...] = h_new
    c_sc[...] = c_new

    # Fused head: column 0 = actor logit difference, column 1 = critic value.
    head = jnp.dot(h_new, whd_ref[...], preferred_element_type=jnp.float32) + bhd_ref[...]
    # Closed-form 2-way softmax: softmax([l0, l1]) = [sigmoid(l0-l1), 1 - sigmoid(l0-l1)]
    p0 = jax.nn.sigmoid(head[:, 0:1])
    value = head[:, 1:2]

    # Pack everything into one lane-dense (B, 128) slab.
    out_ref[0, :, 0:H] = h_new
    out_ref[0, :, H:2 * H] = c_new
    out_ref[0, :, 2 * H:2 * H + 1] = p0
    out_ref[0, :, 2 * H + 1:2 * H + 2] = 1.0 - p0
    out_ref[0, :, 2 * H + 2:2 * H + 3] = value
    out_ref[0, :, 2 * H + 3:] = jnp.zeros((B, LANES - (2 * H + 3)), jnp.float32)


def prepare_params(params):
    """Host-side, ONCE: transpose weights, fuse biases, reorder gates to [i|f|o|g],
    and fuse the actor/critic heads into an (H, 2) matrix. Not on the per-step path."""
    four_h = params["w_ih"].shape[0]
    H = four_h // 4
    # PyTorch gate order is [i | f | g | o]; reorder rows to [i | f | o | g].
    perm = jnp.concatenate([jnp.arange(0, 2 * H), jnp.arange(3 * H, 4 * H),
                            jnp.arange(2 * H, 3 * H)])
    w_ih_t = params["w_ih"][perm].T                               # (I, 4H)
    w_hh_t = params["w_hh"][perm].T                               # (H, 4H)
    b_gates = (params["b_ih"] + params["b_hh"])[perm][None]       # (1, 4H)
    # Head column 0: actor logit difference (2-way softmax closed form); column 1: critic.
    w_head = jnp.stack([params["w_actor"][0] - params["w_actor"][1],
                        params["w_critic"][0]], axis=1)           # (H, 2)
    b_head = jnp.stack([params["b_actor"][0] - params["b_actor"][1],
                        params["b_critic"][0]])[None]             # (1, 2)
    return {"w_ih_t": w_ih_t, "w_hh_t": w_hh_t, "b_gates": b_gates,
            "w_head": w_head, "b_head": b_head}


def lstm_a2c_rollout(x_seq, hidden, prep):
    """Run T sequential LSTMCell+heads steps in one kernel.
    x_seq: (T, B, I). hidden: (h0, c0), each (B, H).
    Returns ((policy (T,B,2), value (T,B)), (h_T, c_T))."""
    h0, c0 = hidden
    T, B, I = x_seq.shape
    H = h0.shape[-1]          # static (from shape), safe under jit
    assert 2 * H + 3 <= LANES, "packed output slab requires 2H+3 <= 128"
    assert B % 8 == 0, "batch must be a multiple of 8 sublanes"

    grid_spec = pltpu.PrefetchScalarGridSpec(
        num_scalar_prefetch=0,
        grid=(T,),
        in_specs=[
            pl.BlockSpec((1, B, I), lambda t: (t, 0, 0)),        # x_t
            pl.BlockSpec((B, H), lambda t: (0, 0)),              # h0 (read at t==0)
            pl.BlockSpec((B, H), lambda t: (0, 0)),              # c0 (read at t==0)
            pl.BlockSpec((I, 4 * H), lambda t: (0, 0)),          # w_ih^T (gate-reordered)
            pl.BlockSpec((H, 4 * H), lambda t: (0, 0)),          # w_hh^T (gate-reordered)
            pl.BlockSpec((1, 4 * H), lambda t: (0, 0)),          # fused gate bias
            pl.BlockSpec((H, 2), lambda t: (0, 0)),              # fused head weights
            pl.BlockSpec((1, 2), lambda t: (0, 0)),              # fused head bias
        ],
        out_specs=pl.BlockSpec((1, B, LANES), lambda t: (t, 0, 0)),
        scratch_shapes=[pltpu.VMEM((B, H), jnp.float32),         # h carry
                        pltpu.VMEM((B, H), jnp.float32)],        # c carry
    )
    out = pl.pallas_call(
        lstm_a2c_kernel,
        out_shape=jax.ShapeDtypeStruct((T, B, LANES), jnp.float32),
        grid_spec=grid_spec,
        compiler_params=pltpu.CompilerParams(
            dimension_semantics=("arbitrary",)),   # sequential: state carried in scratch
    )(x_seq, h0, c0, prep["w_ih_t"], prep["w_hh_t"], prep["b_gates"],
      prep["w_head"], prep["b_head"])

    h_last = out[-1, :, :H]
    c_last = out[-1, :, H:2 * H]
    policy = out[:, :, 2 * H:2 * H + 2]
    value = out[:, :, 2 * H + 2]
    return (policy, value), (h_last, c_last)


lstm_a2c_rollout_jit = jax.jit(lstm_a2c_rollout)


def lstm_a2c_step(x, hidden, prep):
    """Module-parity single-step forward (same as torch LSTM.forward)."""
    (policy, value), new_hidden = lstm_a2c_rollout_jit(x[None], hidden, prep)
    return (policy[0], value[0]), new_hidden


def init_params(key, input_size, hidden_size):
    """Deterministic init matching PyTorch default shapes (uniform +-1/sqrt(H))."""
    k = 1.0 / jnp.sqrt(jnp.float32(hidden_size))
    keys = jax.random.split(key, 8)
    u = lambda kk, shape, bound: jax.random.uniform(kk, shape, jnp.float32, -bound, bound)
    return {
        "w_ih": u(keys[0], (4 * hidden_size, input_size), k),
        "w_hh": u(keys[1], (4 * hidden_size, hidden_size), k),
        "b_ih": u(keys[2], (4 * hidden_size,), k),
        "b_hh": u(keys[3], (4 * hidden_size,), k),
        "w_actor": u(keys[4], (2, hidden_size), k),
        "b_actor": u(keys[5], (2,), k),
        "w_critic": u(keys[6], (1, hidden_size), k),
        "b_critic": u(keys[7], (1,), k),
    }


def reference_rollout(x_seq, hidden, params):
    """Pure-JAX reference replicating torch.nn.LSTMCell + heads, stepped T times."""
    hp = jax.lax.Precision.HIGHEST
    h, c = hidden
    H = h.shape[-1]
    policies, values = [], []
    for t in range(x_seq.shape[0]):
        x = x_seq[t]
        gates = (jnp.dot(x, params["w_ih"].T, precision=hp) + params["b_ih"]
                 + jnp.dot(h, params["w_hh"].T, precision=hp) + params["b_hh"])
        i = jax.nn.sigmoid(gates[:, :H])
        f = jax.nn.sigmoid(gates[:, H:2 * H])
        g = jnp.tanh(gates[:, 2 * H:3 * H])
        o = jax.nn.sigmoid(gates[:, 3 * H:])
        c = f * c + i * g
        h = o * jnp.tanh(c)
        logits = jnp.dot(h, params["w_actor"].T, precision=hp) + params["b_actor"]
        policies.append(jax.nn.softmax(logits, axis=1))
        values.append((jnp.dot(h, params["w_critic"].T, precision=hp)
                       + params["b_critic"]).squeeze(-1))
    return (jnp.stack(policies), jnp.stack(values)), (h, c)


if __name__ == "__main__":
    T = 8             # timesteps fused into one kernel call
    batch_size = 8
    hidden_size = 32
    input_size = 4    # (p_a one-hot dim 2, p_r dim 1, t dim 1)

    key = jax.random.PRNGKey(0)
    kp, kx = jax.random.split(key)
    params = init_params(kp, input_size, hidden_size)
    prep = prepare_params(params)   # hoisted: done once, not per step

    x_seq = jax.random.normal(kx, (T, batch_size, input_size), jnp.float32)

    # init_hidden: zeros
    hidden = (jnp.zeros((batch_size, hidden_size), jnp.float32),
              jnp.zeros((batch_size, hidden_size), jnp.float32))

    # Time-fused rollout (T steps in one pallas_call).
    (policy, value), new_hidden = lstm_a2c_rollout_jit(x_seq, hidden, prep)
    jax.block_until_ready((policy, value, new_hidden))

    (p_ref, v_ref), (h_ref, c_ref) = reference_rollout(x_seq, hidden, params)
    assert policy.shape == (T, batch_size, 2) and value.shape == (T, batch_size)
    assert jnp.allclose(policy, p_ref, atol=2e-4), "policy mismatch"
    assert jnp.allclose(value, v_ref, atol=2e-4), "value mismatch"
    assert jnp.allclose(new_hidden[0], h_ref, atol=2e-4), "hidden mismatch"
    assert jnp.allclose(new_hidden[1], c_ref, atol=2e-4), "cell mismatch"

    # Module-parity single-step call (torch forward equivalent).
    (p1, v1), hid1 = lstm_a2c_step(x_seq[0], hidden, prep)
    jax.block_until_ready((p1, v1, hid1))
    assert jnp.allclose(p1, p_ref[0], atol=2e-4) and jnp.allclose(v1, v_ref[0], atol=2e-4)

    print("KERNEL_OK")
</pallas_src>

<mosaic_0001>
module attributes {stable_mosaic.version = 11 : i64} {
  func.func @lstm_a2c_kernel(%arg0: i32, %arg1: memref<1x8x4xf32, #tpu.memory_space<vmem>>, %arg2: memref<8x32xf32, #tpu.memory_space<vmem>>, %arg3: memref<8x32xf32, #tpu.memory_space<vmem>>, %arg4: memref<4x128xf32, #tpu.memory_space<vmem>>, %arg5: memref<32x128xf32, #tpu.memory_space<vmem>>, %arg6: memref<1x128xf32, #tpu.memory_space<vmem>>, %arg7: memref<32x2xf32, #tpu.memory_space<vmem>>, %arg8: memref<1x2xf32, #tpu.memory_space<vmem>>, %arg9: memref<1x8x128xf32, #tpu.memory_space<vmem>>, %arg10: memref<8x32xf32, #tpu.memory_space<vmem>>, %arg11: memref<8x32xf32, #tpu.memory_space<vmem>>) attributes {dimension_semantics = [#tpu.dimension_semantics<arbitrary>], iteration_bounds = array<i64: 8>, scalar_prefetch = 0 : i64, scratch_operands = 2 : i64, tpu.core_type = #tpu.core_type<tc>, window_params = [{transform_indices = @transform_0, window_bounds = array<i64: 1, 8, 4>}, {pipeline_mode = #tpu.pipeline_mode<synchronous>, transform_indices = @transform_1, window_bounds = array<i64: 8, 32>}, {pipeline_mode = #tpu.pipeline_mode<synchronous>, transform_indices = @transform_2, window_bounds = array<i64: 8, 32>}, {pipeline_mode = #tpu.pipeline_mode<synchronous>, transform_indices = @transform_3, window_bounds = array<i64: 4, 128>}, {pipeline_mode = #tpu.pipeline_mode<synchronous>, transform_indices = @transform_4, window_bounds = array<i64: 32, 128>}, {pipeline_mode = #tpu.pipeline_mode<synchronous>, transform_indices = @transform_5, window_bounds = array<i64: 1, 128>}, {pipeline_mode = #tpu.pipeline_mode<synchronous>, transform_indices = @transform_6, window_bounds = array<i64: 32, 2>}, {pipeline_mode = #tpu.pipeline_mode<synchronous>, transform_indices = @transform_7, window_bounds = array<i64: 1, 2>}, {transform_indices = @transform_8, window_bounds = array<i64: 1, 8, 128>}]} {
    %c0_i32 = arith.constant 0 : i32
    %0 = arith.cmpi eq, %arg0, %c0_i32 : i32
    %1 = arith.extui %0 : i1 to i32
    %c0_i32_0 = arith.constant 0 : i32
    %2 = arith.cmpi ne, %1, %c0_i32_0 : i32
    scf.if %2 {
      %c0_40 = arith.constant 0 : index
      %c0_41 = arith.constant 0 : index
      %66 = vector.load %arg2[%c0_40, %c0_41] : memref<8x32xf32, #tpu.memory_space<vmem>>, vector<8x32xf32>
      %c0_42 = arith.constant 0 : index
      %c0_43 = arith.constant 0 : index
      %67 = vector.load %arg10[%c0_42, %c0_43] : memref<8x32xf32, #tpu.memory_space<vmem>>, vector<8x32xf32>
      tpu.vector_store %arg10[%c0_42, %c0_43], %66 {strides = array<i32>} : memref<8x32xf32, #tpu.memory_space<vmem>>, vector<8x32xf32>,
      %c0_44 = arith.constant 0 : index
      %c0_45 = arith.constant 0 : index
      %68 = vector.load %arg3[%c0_44, %c0_45] : memref<8x32xf32, #tpu.memory_space<vmem>>, vector<8x32xf32>
      %c0_46 = arith.constant 0 : index
      %c0_47 = arith.constant 0 : index
      %69 = vector.load %arg11[%c0_46, %c0_47] : memref<8x32xf32, #tpu.memory_space<vmem>>, vector<8x32xf32>
      tpu.vector_store %arg11[%c0_46, %c0_47], %68 {strides = array<i32>} : memref<8x32xf32, #tpu.memory_space<vmem>>, vector<8x32xf32>,
    } else {
    }
    %c0 = arith.constant 0 : index
    %c0_1 = arith.constant 0 : index
    %c0_2 = arith.constant 0 : index
    %3 = vector.load %arg1[%c0, %c0_1, %c0_2] : memref<1x8x4xf32, #tpu.memory_space<vmem>>, vector<1x8x4xf32>
    %4 = vector.shape_cast %3 : vector<1x8x4xf32> to vector<8x4xf32>
    %c0_3 = arith.constant 0 : index
    %c0_4 = arith.constant 0 : index
    %5 = vector.load %arg10[%c0_3, %c0_4] : memref<8x32xf32, #tpu.memory_space<vmem>>, vector<8x32xf32>
    %c0_5 = arith.constant 0 : index
    %c0_6 = arith.constant 0 : index
    %6 = vector.load %arg11[%c0_5, %c0_6] : memref<8x32xf32, #tpu.memory_space<vmem>>, vector<8x32xf32>
    %c0_7 = arith.constant 0 : index
    %c0_8 = arith.constant 0 : index
    %7 = vector.load %arg4[%c0_7, %c0_8] : memref<4x128xf32, #tpu.memory_space<vmem>>, vector<4x128xf32>
    %cst = arith.constant dense<0.000000e+00> : vector<8x128xf32>
    %8 = tpu.matmul %4, %7, %cst {dimension_numbers = #tpu.dot_dimension_numbers<[1], [0], [0], [1], [0, 0, 1, 1], [], []>} : vector<8x4xf32>, vector<4x128xf32>, vector<8x128xf32> -> vector<8x128xf32>
    %c0_9 = arith.constant 0 : index
    %c0_10 = arith.constant 0 : index
    %9 = vector.load %arg5[%c0_9, %c0_10] : memref<32x128xf32, #tpu.memory_space<vmem>>, vector<32x128xf32>
    %cst_11 = arith.constant dense<0.000000e+00> : vector<8x128xf32>
    %10 = tpu.matmul %5, %9, %cst_11 {dimension_numbers = #tpu.dot_dimension_numbers<[1], [0], [0], [1], [0, 0, 1, 1], [], []>} : vector<8x32xf32>, vector<32x128xf32>, vector<8x128xf32> -> vector<8x128xf32>
    %11 = arith.addf %8, %10 : vector<8x128xf32>
    %c0_12 = arith.constant 0 : index
    %c0_13 = arith.constant 0 : index
    %12 = vector.load %arg6[%c0_12, %c0_13] : memref<1x128xf32, #tpu.memory_space<vmem>>, vector<1x128xf32>
    %13 = vector.broadcast %12 : vector<1x128xf32> to vector<8x128xf32>
    %14 = arith.addf %11, %13 : vector<8x128xf32>
    %15 = vector.extract_strided_slice %14 {offsets = [0, 0], sizes = [8, 96], strides = [1, 1]} : vector<8x128xf32> to vector<8x96xf32>
    %16 = arith.negf %15 : vector<8x96xf32>
    %17 = math.exp %16 : vector<8x96xf32>
    %cst_14 = arith.constant 1.000000e+00 : f32
    %18 = vector.broadcast %cst_14 : f32 to vector<8x96xf32>
    %19 = arith.addf %18, %17 : vector<8x96xf32>
    %20 = arith.divf %18, %19 : vector<8x96xf32>
    %21 = vector.extract_strided_slice %14 {offsets = [0, 96], sizes = [8, 32], strides = [1, 1]} : vector<8x128xf32> to vector<8x32xf32>
    %22 = math.tanh %21 : vector<8x32xf32>
    %23 = vector.extract_strided_slice %20 {offsets = [0, 0], sizes = [8, 32], strides = [1, 1]} : vector<8x96xf32> to vector<8x32xf32>
    %24 = vector.extract_strided_slice %20 {offsets = [0, 32], sizes = [8, 32], strides = [1, 1]} : vector<8x96xf32> to vector<8x32xf32>
    %25 = vector.extract_strided_slice %20 {offsets = [0, 64], sizes = [8, 32], strides = [1, 1]} : vector<8x96xf32> to vector<8x32xf32>
    %26 = arith.mulf %24, %6 : vector<8x32xf32>
    %27 = arith.mulf %23, %22 : vector<8x32xf32>
    %28 = arith.addf %26, %27 : vector<8x32xf32>
    %29 = math.tanh %28 : vector<8x32xf32>
    %30 = arith.mulf %25, %29 : vector<8x32xf32>
    %c0_15 = arith.constant 0 : index
    %c0_16 = arith.constant 0 : index
    %31 = vector.load %arg10[%c0_15, %c0_16] : memref<8x32xf32, #tpu.memory_space<vmem>>, vector<8x32xf32>
    tpu.vector_store %arg10[%c0_15, %c0_16], %30 {strides = array<i32>} : memref<8x32xf32, #tpu.memory_space<vmem>>, vector<8x32xf32>,
    %c0_17 = arith.constant 0 : index
    %c0_18 = arith.constant 0 : index
    %32 = vector.load %arg11[%c0_17, %c0_18] : memref<8x32xf32, #tpu.memory_space<vmem>>, vector<8x32xf32>
    tpu.vector_store %arg11[%c0_17, %c0_18], %28 {strides = array<i32>} : memref<8x32xf32, #tpu.memory_space<vmem>>, vector<8x32xf32>,
    %c0_19 = arith.constant 0 : index
    %c0_20 = arith.constant 0 : index
    %33 = vector.load %arg7[%c0_19, %c0_20] : memref<32x2xf32, #tpu.memory_space<vmem>>, vector<32x2xf32>
    %cst_21 = arith.constant dense<0.000000e+00> : vector<8x2xf32>
    %34 = tpu.matmul %30, %33, %cst_21 {dimension_numbers = #tpu.dot_dimension_numbers<[1], [0], [0], [1], [0, 0, 1, 1], [], []>} : vector<8x32xf32>, vector<32x2xf32>, vector<8x2xf32> -> vector<8x2xf32>
    %c0_22 = arith.constant 0 : index
    %c0_23 = arith.constant 0 : index
    %35 = vector.load %arg8[%c0_22, %c0_23] : memref<1x2xf32, #tpu.memory_space<vmem>>, vector<1x2xf32>
    %36 = vector.broadcast %35 : vector<1x2xf32> to vector<8x2xf32>
    %37 = arith.addf %34, %36 : vector<8x2xf32>
    %38 = vector.extract_strided_slice %37 {offsets = [0, 0], sizes = [8, 1], strides = [1, 1]} : vector<8x2xf32> to vector<8x1xf32>
    %39 = arith.negf %38 : vector<8x1xf32>
    %40 = math.exp %39 : vector<8x1xf32>
    %cst_24 = arith.constant 1.000000e+00 : f32
    %41 = vector.broadcast %cst_24 : f32 to vector<8x1xf32>
    %42 = arith.addf %41, %40 : vector<8x1xf32>
    %43 = arith.divf %41, %42 : vector<8x1xf32>
    %44 = vector.extract_strided_slice %37 {offsets = [0, 1], sizes = [8, 1], strides = [1, 1]} : vector<8x2xf32> to vector<8x1xf32>
    %c0_25 = arith.constant 0 : index
    %c0_26 = arith.constant 0 : index
    %c0_27 = arith.constant 0 : index
    %45 = vector.load %arg9[%c0_25, %c0_26, %c0_27] : memref<1x8x128xf32, #tpu.memory_space<vmem>>, vector<1x8x32xf32>
    %46 = vector.shape_cast %45 : vector<1x8x32xf32> to vector<8x32xf32>
    %47 = vector.shape_cast %30 : vector<8x32xf32> to vector<1x8x32xf32>
    tpu.vector_store %arg9[%c0_25, %c0_26, %c0_27], %47 {strides = array<i32>} : memref<1x8x128xf32, #tpu.memory_space<vmem>>, vector<1x8x32xf32>,
    %c0_28 = arith.constant 0 : index
    %c0_29 = arith.constant 0 : index
    %c32 = arith.constant 32 : index
    %48 = vector.load %arg9[%c0_28, %c0_29, %c32] : memref<1x8x128xf32, #tpu.memory_space<vmem>>, vector<1x8x32xf32>
    %49 = vector.shape_cast %48 : vector<1x8x32xf32> to vector<8x32xf32>
    %50 = vector.shape_cast %28 : vector<8x32xf32> to vector<1x8x32xf32>
    tpu.vector_store %arg9[%c0_28, %c0_29, %c32], %50 {strides = array<i32>} : memref<1x8x128xf32, #tpu.memory_space<vmem>>, vector<1x8x32xf32>,
    %c0_30 = arith.constant 0 : index
    %c0_31 = arith.constant 0 : index
    %c64 = arith.constant 64 : index
    %51 = vector.load %arg9[%c0_30, %c0_31, %c64] : memref<1x8x128xf32, #tpu.memory_space<vmem>>, vector<1x8x1xf32>
    %52 = vector.shape_cast %51 : vector<1x8x1xf32> to vector<8x1xf32>
    %53 = vector.shape_cast %43 : vector<8x1xf32> to vector<1x8x1xf32>
    tpu.vector_store %arg9[%c0_30, %c0_31, %c64], %53 {strides = array<i32>} : memref<1x8x128xf32, #tpu.memory_space<vmem>>, vector<1x8x1xf32>,
    %cst_32 = arith.constant 1.000000e+00 : f32
    %54 = vector.broadcast %cst_32 : f32 to vector<8x1xf32>
    %55 = arith.subf %54, %43 : vector<8x1xf32>
    %c0_33 = arith.constant 0 : index
    %c0_34 = arith.constant 0 : index
    %c65 = arith.constant 65 : index
    %56 = vector.load %arg9[%c0_33, %c0_34, %c65] : memref<1x8x128xf32, #tpu.memory_space<vmem>>, vector<1x8x1xf32>
    %57 = vector.shape_cast %56 : vector<1x8x1xf32> to vector<8x1xf32>
    %58 = vector.shape_cast %55 : vector<8x1xf32> to vector<1x8x1xf32>
    tpu.vector_store %arg9[%c0_33, %c0_34, %c65], %58 {strides = array<i32>} : memref<1x8x128xf32, #tpu.memory_space<vmem>>, vector<1x8x1xf32>,
    %c0_35 = arith.constant 0 : index
    %c0_36 = arith.constant 0 : index
    %c66 = arith.constant 66 : index
    %59 = vector.load %arg9[%c0_35, %c0_36, %c66] : memref<1x8x128xf32, #tpu.memory_space<vmem>>, vector<1x8x1xf32>
    %60 = vector.shape_cast %59 : vector<1x8x1xf32> to vector<8x1xf32>
    %61 = vector.shape_cast %44 : vector<8x1xf32> to vector<1x8x1xf32>
    tpu.vector_store %arg9[%c0_35, %c0_36, %c66], %61 {strides = array<i32>} : memref<1x8x128xf32, #tpu.memory_space<vmem>>, vector<1x8x1xf32>,
    %cst_37 = arith.constant 0.000000e+00 : f32
    %62 = vector.broadcast %cst_37 : f32 to vector<8x61xf32>
    %c0_38 = arith.constant 0 : index
    %c0_39 = arith.constant 0 : index
    %c67 = arith.constant 67 : index
    %63 = vector.load %arg9[%c0_38, %c0_39, %c67] : memref<1x8x128xf32, #tpu.memory_space<vmem>>, vector<1x8x61xf32>
    %64 = vector.shape_cast %63 : vector<1x8x61xf32> to vector<8x61xf32>
    %65 = vector.shape_cast %62 : vector<8x61xf32> to vector<1x8x61xf32>
    tpu.vector_store %arg9[%c0_38, %c0_39, %c67], %65 {strides = array<i32>} : memref<1x8x128xf32, #tpu.memory_space<vmem>>, vector<1x8x61xf32>,
    return
  }
  func.func @transform_0(%arg0: i32) -> (i32, i32, i32) {
    %c0_i32 = arith.constant 0 : i32
    %c0_i32_0 = arith.constant 0 : i32
    %c0_i32_1 = arith.constant 0 : i32
    return %arg0, %c0_i32, %c0_i32_0 : i32, i32, i32
  }
  func.func @transform_1(%arg0: i32) -> (i32, i32) {
    %c0_i32 = arith.constant 0 : i32
    %c0_i32_0 = arith.constant 0 : i32
    %c0_i32_1 = arith.constant 0 : i32
    return %c0_i32, %c0_i32_0 : i32, i32
  }
  func.func @transform_2(%arg0: i32) -> (i32, i32) {
    %c0_i32 = arith.constant 0 : i32
    %c0_i32_0 = arith.constant 0 : i32
    %c0_i32_1 = arith.constant 0 : i32
    return %c0_i32, %c0_i32_0 : i32, i32
  }
  func.func @transform_3(%arg0: i32) -> (i32, i32) {
    %c0_i32 = arith.constant 0 : i32
    %c0_i32_0 = arith.constant 0 : i32
    %c0_i32_1 = arith.constant 0 : i32
    return %c0_i32, %c0_i32_0 : i32, i32
  }
  func.func @transform_4(%arg0: i32) -> (i32, i32) {
    %c0_i32 = arith.constant 0 : i32
    %c0_i32_0 = arith.constant 0 : i32
    %c0_i32_1 = arith.constant 0 : i32
    return %c0_i32, %c0_i32_0 : i32, i32
  }
  func.func @transform_5(%arg0: i32) -> (i32, i32) {
    %c0_i32 = arith.constant 0 : i32
    %c0_i32_0 = arith.constant 0 : i32
    %c0_i32_1 = arith.constant 0 : i32
    return %c0_i32, %c0_i32_0 : i32, i32
  }
  func.func @transform_6(%arg0: i32) -> (i32, i32) {
    %c0_i32 = arith.constant 0 : i32
    %c0_i32_0 = arith.constant 0 : i32
    %c0_i32_1 = arith.constant 0 : i32
    return %c0_i32, %c0_i32_0 : i32, i32
  }
  func.func @transform_7(%arg0: i32) -> (i32, i32) {
    %c0_i32 = arith.constant 0 : i32
    %c0_i32_0 = arith.constant 0 : i32
    %c0_i32_1 = arith.constant 0 : i32
    return %c0_i32, %c0_i32_0 : i32, i32
  }
  func.func @transform_8(%arg0: i32) -> (i32, i32, i32) {
    %c0_i32 = arith.constant 0 : i32
    %c0_i32_0 = arith.constant 0 : i32
    %c0_i32_1 = arith.constant 0 : i32
    return %arg0, %c0_i32, %c0_i32_0 : i32, i32, i32
  }
}

</mosaic_0001>

<bundles_post_ra>
// kernel: lstm_a2c_rollout.1
= control target key start
LH: loop header
LB: loop body
LE: loop exit
PB: predicated region body
PF: predicated region fallthrough
CT: control target
= control target key end

     0   :  { %s824_s27 = smov 0   ;;  %s906_s0 = inlined_call_operand.vmem [shape: f32[8,8,4], index: 0, kind: input, shape index: {}]   ;;  %s907_s1 = inlined_call_operand.vmem [shape: f32[8,32], index: 1, kind: input, shape index: {}]   ;;  %s908_s2 = inlined_call_operand.vmem [shape: f32[8,32], index: 2, kind: input, shape index: {}]   ;;  %s909_s3 = inlined_call_operand.vmem [shape: f32[4,128], index: 3, kind: input, shape index: {}]   ;;  %s910_s4 = inlined_call_operand.vmem [shape: f32[32,128], index: 4, kind: input, shape index: {}]   ;;  %s911_s5 = inlined_call_operand.vmem [shape: f32[1,128], index: 5, kind: input, shape index: {}]   ;;  %s912_s6 = inlined_call_operand.vmem [shape: f32[32,2], index: 6, kind: input, shape index: {}]   ;;  %s913_s7 = inlined_call_operand.vmem [shape: f32[1,2], index: 7, kind: input, shape index: {}]   ;;  %s914_s8 = inlined_call_operand.vmem [shape: f32[8,8,128], index: 8, kind: output, shape index: {}]  }
   0x1 LB: > { %s682_s28 = sadd.s32 4294967295, %s771_s27   ;;  %p686_p0 = scmp.ge.s32.totalorder %s771_s27, 1  ;;  %s771_s27 = sphi %s824_s27, %s18_s27  }
   0x2   : > { %p261_p1 = scmp.lt.s32.totalorder %s771_s27, 9 }
   0x4   : > { %p262_p2 = pnand %p686_p0, %p261_p1 }
   0x5   : > { %p293_p3 = scmp.lt.s32.totalorder (!%p262_p2), %s682_s28, 7  ;;  %p689_p4 = scmp.ne.s32.totalorder (!%p262_p2), %s682_s28, 0 }
   0x6   : > { %265 = sbr.rel (%p262_p2) target bundleno = 1069 (0x42d), region = 52 }
   0xb   : > { %s294_s29 = scalar_select %p293_p3, %s682_s28, 7 }
   0xc   : > { %304 = sbr.rel (%p689_p4) target bundleno = 20 (0x14), region = 56 }
   0xd   : > { %s687_s30 = sshll.u32 %s294_s29, 3 }
   0xe   : > { %s296_s11 = scalar_lea.vmem %s906_s0, %s687_s30  ;;  %s838_s14 = scalar_lea.vmem %s914_s8, %s687_s30 }
  0x11   : > { %v305_v0 = vld [vmem:[%s907_s1] sm:$0xff]  ;;  %vm306_vm0 = vcmask 261120  }
  0x12   : > { %v308_v1 = vld [vmem:[%s908_s2] sm:$0xff]  ;;  %307 = vst.msk [vmem:[#allocation2] sm:$0xff] %vm306_vm0, %v305_v0 }
  0x13   : > { %309 = vst.msk [vmem:[#allocation3] sm:$0xff] %vm306_vm0, %v308_v1 }
  0x14 PF: > { %v317_v2 = vld [vmem:[%s910_s4 + $0x18] sm:$0xff]  ;;  %vm396_vm1 = vcmask 1043456   ;;  %v773_v3 = vmov 0.0   ;;  %v316_v4 = vld [vmem:[%s910_s4 + $0x10] sm:$0xff]  ;;  %v313_v5 = vld [vmem:[%s909_s3] sm:$0xf] }
  0x15   : > { %712 = vmatprep.subr.mxu0 %v773_v3  ;;  %723 = vmatprep.subr.mxu1 %v773_v3  ;;  %v310_v6 = vld [vmem:[%s296_s11] sm:$0xff]  ;;  %vm392_vm2 = vcmask 31744   ;;  %v315_v7 = vld [vmem:[%s910_s4 + $0x8] sm:$0xff]  ;;  %vm774_vm3 = vmmov 0   ;;  %vm318_vm4 = vcmask 261120   ;;  %s775_s10 = smov 32  }
  0x16   : > { %713 = vmatpush3.msra.mxu0 %v317_v2  ;;  %724 = vmatpush3.msk.msra.mxu1 %vm396_vm1, %v313_v5  ;;  %v314_v8 = vld [vmem:[%s910_s4] sm:$0xff]  ;;  %v519_v29 = vld [vmem:[%s912_s6 + $0x18] sm:$0xff]  ;;  %v518_v30 = vld [vmem:[%s912_s6 + $0x10] sm:$0xff]  ;;  %s776_s20 = smov 64   ;;  %vm606_vm5 = vcmask 523520   ;;  %s777_s23 = smov 65  }
  0x17   : > { %714 = vmatprep.subr.mxu0 %v773_v3  ;;  %725 = vmatprep.mubr.msk.f32.mxu1 %vm774_vm3, %v773_v3  ;;  %v693_v13 = vld [vmem:[%s911_s5] ss:$0 sm:$0xff]  ;;  %v517_v31 = vld [vmem:[%s912_s6 + $0x8] sm:$0xff]  ;;  %s778_s24 = smov 96   ;;  %vm612_vm6 = vcmask 531968   ;;  %vm619_vm7 = vcmask 540168  }
  0x18   : > { %715 = vmatpush3.msra.mxu0 %v316_v4  ;;  %726 = vmatmul.mubr.msk.f32.vlgmr.msra.gmra.mxu1 %vm392_vm2, %v310_v6  ;;  %v516_v32 = vld [vmem:[%s912_s6] sm:$0xff]  ;;  %vm625_vm8 = vcmask 548368   ;;  %vm627_vm9 = vcmask 1048088  }
  0x19   : > { %716 = vmatprep.subr.mxu0 %v773_v3  ;;  %720 = vmatprep.mubr.msk.f32.mxu0 %vm774_vm3, %v773_v3  ;;  %v311_v9 = vld [vmem:[#allocation2] sm:$0xff] }
  0x1a   : > { %717 = vmatpush3.msra.mxu0 %v315_v7  ;;  %728 = vmatprep.subr.mxu1 %v773_v3  ;;  %v312_v18 = vld [vmem:[#allocation3] sm:$0xff]  ;;  %v695_v37 = vld [vmem:[%s913_s7] ss:$0 sm:$0xff] }
  0x1b   : > { %718 = vmatprep.subr.mxu0 %v773_v3  ;;  %736 = vmatprep.mubr.msk.f32.mxu1 %vm774_vm3, %v773_v3 }
  0x1c   : > { %719 = vmatpush3.msra.mxu0 %v314_v8  ;;  %729 = vmatpush3.msra.mxu1 %v519_v29 }
  0x1d   : > { %721 = vmatmul.mubr.msk.f32.vlgmr.msra.gmra.mxu0 %vm318_vm4, %v311_v9  ;;  %730 = vmatprep.subr.mxu1 %v773_v3 }
  0x1e   : > { %731 = vmatpush3.msra.mxu1 %v518_v30 }
  0x1f   : > { %732 = vmatprep.subr.mxu1 %v773_v3 }
  0x20   : > { %733 = vmatpush3.msra.mxu1 %v517_v31 }
  0x21   : > { %734 = vmatprep.subr.mxu1 %v773_v3 }
  0x22   : > { %735 = vmatpush3.msra.mxu1 %v516_v32 }
  0xd8   : > { %v466_v10 = vpop.f32.mrf.mxu1 }
  0xda   : > { %v727_v11 = vpop.f32.mrf.mxu1 }
  0xdd   : > { %v388_v12 = vpop.f32.mrf.mxu0 }
  0xde   : > { %v467_v14 = vadd.f32 %v466_v10, %v388_v12 }
  0xdf   : > { %v722_v15 = vpop.f32.mrf.mxu0 }
  0xe0   : > { %v477_v16 = vadd.f32 %v693_v13, %v467_v14 }
  0xe2   : > { %753 = vtanh.f32 %v477_v16  ;;  %v694_v19 = vmul.f32 -1.442695, %v477_v16 }
  0xe4   : > { %755 = vpow2.f32 %v694_v19 }
  0xef   : > { %v754_v17 = vpop.eup %753 }
  0xf0   : > { %491 = vrot.lane.b32.xlu0 %v754_v17, %s775_s10 }
  0xf1   : > { %v756_v20 = vpop.eup %755 }
  0xf2   : > { %v481_v21 = vadd.f32 1.0, %v756_v20 }
  0xf4   : > { %486 = vrot.lane.b32.xlu0 %v312_v18, %s775_s10  ;;  %757 = vrcp.f32 %v481_v21 }
 0x101   : > { %v758_v22 = vpop.eup %757 }
 0x162   : > { %v492_v23 = vpop.permute.xlu0 %491 }
 0x163   : > { %v494_v24 = vmul.f32 %v758_v22, %v492_v23 }
 0x165   : > { %496 = vrot.lane.b32.xlu1 %v494_v24, %s775_s10 }
 0x166   : > { %v487_v25 = vpop.permute.xlu0 %486 }
 0x167   : > { %v489_v26 = vmul.f32 %v758_v22, %v487_v25 }
 0x1d7   : > { %v497_v27 = vpop.permute.xlu1 %496 }
 0x1d8   : > { %v499_v28 = vadd.f32 %v497_v27, %v489_v26 }
 0x1da   : > { %759 = vtanh.f32 %v499_v28 }
 0x1e7   : > { %v760_v33 = vpop.eup %759 }
 0x1e8   : > { %502 = vrot.lane.b32.xlu1 %v760_v33, %s775_s10 }
 0x25a   : > { %v503_v34 = vpop.permute.xlu1 %502 }
 0x25b   : > { %v505_v35 = vmul.f32 %v758_v22, %v503_v34 }
 0x25d   : > { %507 = vrot.lane.b32.xlu0 %v505_v35, %s776_s20 }
 0x2cf   : > { %v508_v36 = vpop.permute.xlu0 %507 }
 0x2d0   : > { %510 = vst.msk [vmem:[#allocation2] sm:$0xff] %vm318_vm4, %v508_v36  ;;  %605 = vst.msk [vmem:[%s838_s14] sm:$0xff] %vm318_vm4, %v508_v36  ;;  %737 = vmatmul.mubr.msk.f32.vlgmr.msra.gmra.mxu1 %vm318_vm4, %v508_v36 }
 0x2d1   : > { %607 = vst.msk [vmem:[%s838_s14] sm:$0xff] %vm606_vm5, %v499_v28 }
 0x390   : > { %v595_v38 = vpop.f32.mrf.mxu1 }
 0x391   : > { %v596_v39 = vadd.f32 %v695_v37, %v595_v38 }
 0x392   : > { %v738_v40 = vpop.f32.mrf.mxu1 }
 0x393   : > { %v697_v41 = vmul.f32 -1.442695, %v596_v39 }
 0x395   : > { %761 = vpow2.f32 %v697_v41 }
 0x3a2   : > { %v762_v42 = vpop.eup %761 }
 0x3a3   : > { %v602_v43 = vadd.f32 1.0, %v762_v42 }
 0x3a5   : > { %763 = vrcp.f32 %v602_v43 }
 0x3b2   : > { %v764_v44 = vpop.eup %763 }
 0x3b3   : > { %609 = vrot.lane.b32.xlu1 %v764_v44, %s776_s20  ;;  %v614_v45 = vsub.f32 1.0, %v764_v44 }
 0x3b5   : > { %616 = vrot.lane.b32.xlu0 %v614_v45, %s777_s23 }
 0x3b7   : > { %622 = vrot.lane.b32.xlu1 %v596_v39, %s777_s23 }
 0x3b9   : > { %512 = vrot.lane.b32.xlu0 %v499_v28, %s778_s24 }
 0x425   : > { %v610_v46 = vpop.permute.xlu1 %609 }
 0x426   : > { %613 = vst.msk [vmem:[%s838_s14] sm:$0xff] %vm612_vm6, %v610_v46 }
 0x427   : > { %v617_v47 = vpop.permute.xlu0 %616 }
 0x428   : > { %620 = vst.msk [vmem:[%s838_s14] sm:$0xff] %vm619_vm7, %v617_v47 }
 0x429   : > { %v623_v48 = vpop.permute.xlu1 %622 }
 0x42a   : > { %626 = vst.msk [vmem:[%s838_s14] sm:$0xff] %vm625_vm8, %v623_v48 }
 0x42b   : > { %628 = vst.msk [vmem:[%s838_s14] sm:$0xff] %vm627_vm9, %v773_v3  ;;  %v513_v49 = vpop.permute.xlu0 %512 }
 0x42c   : > { %515 = vst.msk [vmem:[#allocation3] sm:$0xff] %vm318_vm4, %v513_v49 }
 0x42d PF: > { %s18_s27 = sadd.s32 1, %s771_s27  }
 0x42e   : > { %p15_p5 = scmp.ge.s32.totalorder %s18_s27, 10  }
 0x430   :  { %17 = sbr.rel (!%p15_p5) target bundleno = 1 (0x1), region = 86 }

</bundles_post_ra>
